<compile_context>
chip_gen: v7x
topology: tpu7x:2x2x1
jax: 0.10.0
libtpu: 0.0.40
codegen_flags: <defaults>
</compile_context>

<pallas_src>
import jax
import jax.numpy as jnp
from jax.experimental import pallas as pl
from jax.experimental.pallas import tpu as pltpu


# ---------------------------------------------------------------------------
# Kernels
# ---------------------------------------------------------------------------

def _mlp_row_major_kernel(x_ref, w1_ref, b1_ref, w2_ref, b2_ref, w3_ref, b3_ref, o_ref):
    """PyTorch-layout path: x tile (tm, D) -> y tile (tm, 1).

    Weights/biases use constant index_maps so they stay VMEM-resident across the whole
    grid; b3 is a scalar in SMEM.  The final Linear(32, 1) runs on the (nearly idle)
    MXU rather than as a VPU multiply + XLU lane reduce.
    """
    x = x_ref[...]
    h1 = jnp.dot(x, w1_ref[...], preferred_element_type=jnp.float32) + b1_ref[...]
    h1 = jnp.maximum(h1, 0.0).astype(w2_ref.dtype)           # ReLU in f32, cast for MXU op 2
    h2 = jnp.dot(h1, w2_ref[...], preferred_element_type=jnp.float32) + b2_ref[...]
    h2 = jnp.maximum(h2, 0.0).astype(w3_ref.dtype)
    y = jnp.dot(h2, w3_ref[...], preferred_element_type=jnp.float32) + b3_ref[0, 0]
    o_ref[...] = y.astype(o_ref.dtype)                        # (tm, 1)


def _mlp_feature_major_kernel(x_ref, w1_ref, b1_ref, w2_ref, b2_ref, w3_ref, b3_ref, o_ref):
    """Feature-major path: x tile (D, tm) -> y tile (1, tm).

    The batch lives on the lane axis, so every bias-add / ReLU vreg is 100% occupied
    and the (1, tm) output store is lane-dense, unmasked and contiguous in HBM.
    """
    xt = x_ref[...]                                                                     # (D, tm)
    h1 = jnp.dot(w1_ref[...], xt, preferred_element_type=jnp.float32) + b1_ref[...]     # (64, tm)
    h1 = jnp.maximum(h1, 0.0).astype(w2_ref.dtype)
    h2 = jnp.dot(w2_ref[...], h1, preferred_element_type=jnp.float32) + b2_ref[...]     # (32, tm)
    h2 = jnp.maximum(h2, 0.0).astype(w3_ref.dtype)
    y = jnp.dot(w3_ref[...], h2, preferred_element_type=jnp.float32) + b3_ref[0, 0]     # (1, tm)
    o_ref[...] = y.astype(o_ref.dtype)


# ---------------------------------------------------------------------------
# Wrapper
# ---------------------------------------------------------------------------

def _round_up(n, m):
    return ((n + m - 1) // m) * m


def _const_spec(a):
    """Whole-array block with a constant index_map -> DMA'd once, VMEM-resident."""
    n = a.ndim
    return pl.BlockSpec(a.shape, lambda i: (0,) * n)


def _batch_axis_semantics(core_parallel):
    if core_parallel is None:
        try:  # Only v7x has 2 TensorCores/chip; only CORE_PARALLEL shards the grid over them.
            core_parallel = "v7" in jax.devices()[0].device_kind.lower()
        except Exception:
            core_parallel = False
    return (pltpu.CORE_PARALLEL if core_parallel else pltpu.PARALLEL,)


def regression_model_forward(x, params, *, block_rows=8192, features_major=False,
                             core_parallel=None, vmem_limit_bytes=None):
    """Forward pass of RegressionModel.  Returns (B, 1) float32.

    x: (B, input_dim) if features_major=False (PyTorch layout)
       (input_dim, B) if features_major=True  (producer already supplies the transposed
       activation "for free" -- the preferred, fully lane-dense layout).

    block_rows: rows per grid step (default 8192, sweep 4096-32768).  Per-step VMEM
    footprint is ~0.75 KB/row: keep it under ~16 MiB on v5e and ~32 MiB on v7x, or pass
    vmem_limit_bytes explicitly.
    """
    w1, b1, w2, b2, w3, b3 = (params["w1"], params["b1"], params["w2"],
                              params["b2"], params["w3"], params["b3"])
    if features_major:
        D, B = x.shape
    else:
        B, D = x.shape
    assert w1.shape[0] == D, (w1.shape, D)

    # bf16 MXU operands only when x *already* arrives as bf16 (no wrapper-side cast of x).
    # Weights follow x's dtype (tiny one-time cast); biases / accumulation stay f32.
    op_dtype = jnp.bfloat16 if x.dtype == jnp.bfloat16 else jnp.float32
    b3_s = b3.reshape(1, 1).astype(jnp.float32)               # SMEM scalar

    # Batch tiling: no jnp.pad of x -- the grid uses cdiv and Pallas masks the ragged
    # last block (padded rows compute garbage that is never written back).
    row_align = 128 if features_major else 8
    tm = min(_round_up(block_rows, row_align), _round_up(B, row_align))
    grid = (pl.cdiv(B, tm),)

    # Raise the scoped-VMEM limit only when the estimated per-step footprint
    # (double-buffered x tile + h1/h2/cast temporaries + out tile) exceeds the default.
    if vmem_limit_bytes is None:
        est = tm * (2 * D * x.dtype.itemsize + 4 * (64 + 64 + 32 + 32 + 2)) + (2 << 20)
        vmem_limit_bytes = None if est < (14 << 20) else min(int(est * 5 // 4), 64 << 20)

    compiler_params = pltpu.CompilerParams(
        dimension_semantics=_batch_axis_semantics(core_parallel),
        vmem_limit_bytes=vmem_limit_bytes)

    flops = 2 * B * (D * 64 + 64 * 32 + 32)
    bytes_accessed = int(B * D * x.dtype.itemsize + B * 4
                         + (w1.size + w2.size + w3.size) * jnp.dtype(op_dtype).itemsize
                         + (b1.size + b2.size + b3.size) * 4)
    cost = pl.CostEstimate(flops=int(flops), transcendentals=0, bytes_accessed=bytes_accessed)

    if features_major:
        w1t = w1.T.astype(op_dtype)                           # (64, D)
        w2t = w2.T.astype(op_dtype)                           # (32, 64)
        w3t = w3.T.astype(op_dtype)                           # (1, 32)
        b1c = b1.reshape(-1, 1).astype(jnp.float32)           # (64, 1)
        b2c = b2.reshape(-1, 1).astype(jnp.float32)           # (32, 1)
        y_row = pl.pallas_call(
            _mlp_feature_major_kernel,
            out_shape=jax.ShapeDtypeStruct((1, B), jnp.float32),
            grid=grid,
            in_specs=[
                pl.BlockSpec((D, tm), lambda i: (0, i)),      # x: streamed (D, tm) tiles
                _const_spec(w1t), _const_spec(b1c),
                _const_spec(w2t), _const_spec(b2c),
                _const_spec(w3t),
                pl.BlockSpec(memory_space=pltpu.MemorySpace.SMEM),
            ],
            out_specs=pl.BlockSpec((1, tm), lambda i: (0, i)),  # lane-dense, unmasked store
            compiler_params=compiler_params,
            cost_estimate=cost,
        )(x, w1t, b1c, w2t, b2c, w3t, b3_s)
        return y_row.reshape(B, 1)                            # same HBM layout -> free reshape

    # Row-major (PyTorch layout) fallback.
    w1c = w1.astype(op_dtype)                                 # (D, 64)
    w2c = w2.astype(op_dtype)                                 # (64, 32)
    w3c = w3.reshape(-1, 1).astype(op_dtype)                  # (32, 1)  -> MXU final layer
    b1r = b1.reshape(1, -1).astype(jnp.float32)               # (1, 64)
    b2r = b2.reshape(1, -1).astype(jnp.float32)               # (1, 32)
    return pl.pallas_call(
        _mlp_row_major_kernel,
        out_shape=jax.ShapeDtypeStruct((B, 1), jnp.float32),
        grid=grid,
        in_specs=[
            pl.BlockSpec((tm, D), lambda i: (i, 0)),          # x: streamed (tm, D) tiles
            _const_spec(w1c), _const_spec(b1r),
            _const_spec(w2c), _const_spec(b2r),
            _const_spec(w3c),
            pl.BlockSpec(memory_space=pltpu.MemorySpace.SMEM),
        ],
        out_specs=pl.BlockSpec((tm, 1), lambda i: (i, 0)),
        compiler_params=compiler_params,
        cost_estimate=cost,
    )(x, w1c, b1r, w2c, b2r, w3c, b3_s)


# ---------------------------------------------------------------------------
# Params / reference
# ---------------------------------------------------------------------------

def init_params(key, input_dim):
    """Deterministic init mimicking nn.Linear (uniform +/- 1/sqrt(fan_in))."""
    def linear(key, fan_in, fan_out):
        kw, kb = jax.random.split(key)
        bound = 1.0 / jnp.sqrt(fan_in)
        w = jax.random.uniform(kw, (fan_in, fan_out), jnp.float32, -bound, bound)
        b = jax.random.uniform(kb, (1, fan_out), jnp.float32, -bound, bound)
        return w, b

    k1, k2, k3 = jax.random.split(key, 3)
    w1, b1 = linear(k1, input_dim, 64)
    w2, b2 = linear(k2, 64, 32)
    w3, b3 = linear(k3, 32, 1)
    return {"w1": w1, "b1": b1, "w2": w2, "b2": b2, "w3": w3, "b3": b3}


def _reference(x, p):
    h1 = jnp.maximum(x @ p["w1"] + p["b1"], 0.0)
    h2 = jnp.maximum(h1 @ p["w2"] + p["b2"], 0.0)
    return h2 @ p["w3"] + p["b3"]


if __name__ == "__main__":
    key = jax.random.PRNGKey(0)
    k_p, k1, k2, k3 = jax.random.split(key, 4)

    input_dim = 10  # RFE(n_features_to_select=10) -> 10 input features
    params = init_params(k_p, input_dim)

    # 1) Row-major (PyTorch layout), single grid step.
    x_small = jax.random.normal(k1, (8, input_dim), dtype=jnp.float32)
    y_small = regression_model_forward(x_small, params)
    jax.block_until_ready(y_small)
    assert y_small.shape == (8, 1)
    assert jnp.allclose(y_small, _reference(x_small, params), atol=1e-4, rtol=1e-4)

    # 2) Row-major, multi-step grid with a ragged (masked) last block: 1000 rows, 512-row tiles.
    x_big = jax.random.normal(k2, (1000, input_dim), dtype=jnp.float32)
    y_big = regression_model_forward(x_big, params, block_rows=512)
    jax.block_until_ready(y_big)
    assert y_big.shape == (1000, 1)
    assert jnp.allclose(y_big, _reference(x_big, params), atol=1e-4, rtol=1e-4)

    # 3) Feature-major path: producer supplies x already transposed (D, B) ->
    #    fully lane-dense kernel with an unmasked (1, B) output store.
    x_fm = jax.random.normal(k3, (256, input_dim), dtype=jnp.float32)
    y_fm = regression_model_forward(x_fm.T, params, features_major=True)
    jax.block_until_ready(y_fm)
    assert y_fm.shape == (256, 1)
    assert jnp.allclose(y_fm, _reference(x_fm, params), atol=1e-4, rtol=1e-4)

    # 4) bf16 x already in HBM (producer-side): weights follow x's dtype for the MXU,
    #    accumulation stays f32.  bf16-operand tolerance documented at 1e-1.
    x_bf16 = x_fm.astype(jnp.bfloat16)
    y_bf16 = regression_model_forward(x_bf16, params)
    jax.block_until_ready(y_bf16)
    assert y_bf16.shape == (256, 1)
    assert jnp.allclose(y_bf16, _reference(x_bf16.astype(jnp.float32), params),
                        atol=1e-1, rtol=1e-1)

    print("KERNEL_OK")
</pallas_src>

<mosaic_0001>
module attributes {stable_mosaic.version = 11 : i64} {
  func.func @_mlp_row_major_kernel(%arg0: i32, %arg1: memref<8x10xf32, #tpu.memory_space<vmem>>, %arg2: memref<10x64xf32, #tpu.memory_space<vmem>>, %arg3: memref<1x64xf32, #tpu.memory_space<vmem>>, %arg4: memref<64x32xf32, #tpu.memory_space<vmem>>, %arg5: memref<1x32xf32, #tpu.memory_space<vmem>>, %arg6: memref<32x1xf32, #tpu.memory_space<vmem>>, %arg7: memref<1x1xf32, #tpu.memory_space<smem>>, %arg8: memref<8x1xf32, #tpu.memory_space<vmem>>) attributes {dimension_semantics = [#tpu.dimension_semantics<parallel>], iteration_bounds = array<i64: 1>, scalar_prefetch = 0 : i64, scratch_operands = 0 : i64, tpu.core_type = #tpu.core_type<tc>, window_params = [{transform_indices = @transform_0, window_bounds = array<i64: 8, 10>}, {pipeline_mode = #tpu.pipeline_mode<synchronous>, transform_indices = @transform_1, window_bounds = array<i64: 10, 64>}, {pipeline_mode = #tpu.pipeline_mode<synchronous>, transform_indices = @transform_2, window_bounds = array<i64: 1, 64>}, {pipeline_mode = #tpu.pipeline_mode<synchronous>, transform_indices = @transform_3, window_bounds = array<i64: 64, 32>}, {pipeline_mode = #tpu.pipeline_mode<synchronous>, transform_indices = @transform_4, window_bounds = array<i64: 1, 32>}, {pipeline_mode = #tpu.pipeline_mode<synchronous>, transform_indices = @transform_5, window_bounds = array<i64: 32, 1>}, {transform_indices = @transform_6, window_bounds = array<i64: 1, 1>}, {transform_indices = @transform_7, window_bounds = array<i64: 8, 1>}]} {
    %c0 = arith.constant 0 : index
    %c0_0 = arith.constant 0 : index
    %0 = vector.load %arg1[%c0, %c0_0] : memref<8x10xf32, #tpu.memory_space<vmem>>, vector<8x10xf32>
    %c0_1 = arith.constant 0 : index
    %c0_2 = arith.constant 0 : index
    %1 = vector.load %arg2[%c0_1, %c0_2] : memref<10x64xf32, #tpu.memory_space<vmem>>, vector<10x64xf32>
    %cst = arith.constant dense<0.000000e+00> : vector<8x64xf32>
    %2 = tpu.matmul %0, %1, %cst {dimension_numbers = #tpu.dot_dimension_numbers<[1], [0], [0], [1], [0, 0, 1, 1], [], []>} : vector<8x10xf32>, vector<10x64xf32>, vector<8x64xf32> -> vector<8x64xf32>
    %c0_3 = arith.constant 0 : index
    %c0_4 = arith.constant 0 : index
    %3 = vector.load %arg3[%c0_3, %c0_4] : memref<1x64xf32, #tpu.memory_space<vmem>>, vector<1x64xf32>
    %4 = vector.broadcast %3 : vector<1x64xf32> to vector<8x64xf32>
    %5 = arith.addf %2, %4 : vector<8x64xf32>
    %cst_5 = arith.constant 0.000000e+00 : f32
    %6 = vector.broadcast %cst_5 : f32 to vector<8x64xf32>
    %7 = arith.maximumf %5, %6 : vector<8x64xf32>
    %c0_6 = arith.constant 0 : index
    %c0_7 = arith.constant 0 : index
    %8 = vector.load %arg4[%c0_6, %c0_7] : memref<64x32xf32, #tpu.memory_space<vmem>>, vector<64x32xf32>
    %cst_8 = arith.constant dense<0.000000e+00> : vector<8x32xf32>
    %9 = tpu.matmul %7, %8, %cst_8 {dimension_numbers = #tpu.dot_dimension_numbers<[1], [0], [0], [1], [0, 0, 1, 1], [], []>} : vector<8x64xf32>, vector<64x32xf32>, vector<8x32xf32> -> vector<8x32xf32>
    %c0_9 = arith.constant 0 : index
    %c0_10 = arith.constant 0 : index
    %10 = vector.load %arg5[%c0_9, %c0_10] : memref<1x32xf32, #tpu.memory_space<vmem>>, vector<1x32xf32>
    %11 = vector.broadcast %10 : vector<1x32xf32> to vector<8x32xf32>
    %12 = arith.addf %9, %11 : vector<8x32xf32>
    %cst_11 = arith.constant 0.000000e+00 : f32
    %13 = vector.broadcast %cst_11 : f32 to vector<8x32xf32>
    %14 = arith.maximumf %12, %13 : vector<8x32xf32>
    %c0_12 = arith.constant 0 : index
    %c0_13 = arith.constant 0 : index
    %15 = vector.load %arg6[%c0_12, %c0_13] : memref<32x1xf32, #tpu.memory_space<vmem>>, vector<32x1xf32>
    %cst_14 = arith.constant dense<0.000000e+00> : vector<8x1xf32>
    %16 = tpu.matmul %14, %15, %cst_14 {dimension_numbers = #tpu.dot_dimension_numbers<[1], [0], [0], [1], [0, 0, 1, 1], [], []>} : vector<8x32xf32>, vector<32x1xf32>, vector<8x1xf32> -> vector<8x1xf32>
    %c0_15 = arith.constant 0 : index
    %c0_16 = arith.constant 0 : index
    %17 = memref.load %arg7[%c0_15, %c0_16] : memref<1x1xf32, #tpu.memory_space<smem>>
    %18 = vector.broadcast %17 : f32 to vector<8x1xf32>
    %19 = arith.addf %16, %18 : vector<8x1xf32>
    %c0_17 = arith.constant 0 : index
    %c0_18 = arith.constant 0 : index
    %20 = vector.load %arg8[%c0_17, %c0_18] : memref<8x1xf32, #tpu.memory_space<vmem>>, vector<8x1xf32>
    tpu.vector_store %arg8[%c0_17, %c0_18], %19 {strides = array<i32>} : memref<8x1xf32, #tpu.memory_space<vmem>>, vector<8x1xf32>,
    return
  }
  func.func @transform_0(%arg0: i32) -> (i32, i32) {
    %c0_i32 = arith.constant 0 : i32
    %c0_i32_0 = arith.constant 0 : i32
    return %arg0, %c0_i32 : i32, i32
  }
  func.func @transform_1(%arg0: i32) -> (i32, i32) {
    %c0_i32 = arith.constant 0 : i32
    %c0_i32_0 = arith.constant 0 : i32
    %c0_i32_1 = arith.constant 0 : i32
    return %c0_i32, %c0_i32_0 : i32, i32
  }
  func.func @transform_2(%arg0: i32) -> (i32, i32) {
    %c0_i32 = arith.constant 0 : i32
    %c0_i32_0 = arith.constant 0 : i32
    %c0_i32_1 = arith.constant 0 : i32
    return %c0_i32, %c0_i32_0 : i32, i32
  }
  func.func @transform_3(%arg0: i32) -> (i32, i32) {
    %c0_i32 = arith.constant 0 : i32
    %c0_i32_0 = arith.constant 0 : i32
    %c0_i32_1 = arith.constant 0 : i32
    return %c0_i32, %c0_i32_0 : i32, i32
  }
  func.func @transform_4(%arg0: i32) -> (i32, i32) {
    %c0_i32 = arith.constant 0 : i32
    %c0_i32_0 = arith.constant 0 : i32
    %c0_i32_1 = arith.constant 0 : i32
    return %c0_i32, %c0_i32_0 : i32, i32
  }
  func.func @transform_5(%arg0: i32) -> (i32, i32) {
    %c0_i32 = arith.constant 0 : i32
    %c0_i32_0 = arith.constant 0 : i32
    %c0_i32_1 = arith.constant 0 : i32
    return %c0_i32, %c0_i32_0 : i32, i32
  }
  func.func @transform_6(%arg0: i32) -> (i32, i32) {
    %c0_i32 = arith.constant 0 : i32
    %c0_i32_0 = arith.constant 0 : i32
    %c0_i32_1 = arith.constant 0 : i32
    return %c0_i32, %c0_i32_0 : i32, i32
  }
  func.func @transform_7(%arg0: i32) -> (i32, i32) {
    %c0_i32 = arith.constant 0 : i32
    %c0_i32_0 = arith.constant 0 : i32
    return %arg0, %c0_i32 : i32, i32
  }
}

</mosaic_0001>

<bundles_post_ra>
// kernel: tpu_custom_call.1
= control target key start
LH: loop header
LB: loop body
LE: loop exit
PB: predicated region body
PF: predicated region fallthrough
CT: control target
= control target key end

     0   :  { %vm41_vm0 = vcmask 1041408   ;;  %v378_v0 = vmov 0.0|0.0   ;;  %vm379_vm1 = vmmov 1   ;;  %vm380_vm3 = vmmov 0   ;;  %s482_s1 = inlined_call_operand.vmem [shape: f32[10,64], index: 1, kind: input, shape index: {}]   ;;  %s483_s3 = inlined_call_operand.vmem [shape: f32[64,32], index: 3, kind: input, shape index: {}]   ;;  %s484_s0 = inlined_call_operand.vmem [shape: f32[8,10], index: 0, kind: input, shape index: {}]   ;;  %s485_s5 = inlined_call_operand.vmem [shape: f32[32,1], index: 5, kind: input, shape index: {}]   ;;  %s486_s2 = inlined_call_operand.vmem [shape: f32[1,64], index: 2, kind: input, shape index: {}]   ;;  %s487_s4 = inlined_call_operand.vmem [shape: f32[1,32], index: 4, kind: input, shape index: {}]   ;;  %s488_s6 = inlined_call_operand.<no memory space> [shape: f32[1,1], index: 6, kind: input, shape index: {}]   ;;  %s489_s7 = inlined_call_operand.vmem [shape: f32[8,1], index: 7, kind: output, shape index: {}]  }
   0x1   :  { %352 = vmatprep.subr.bf16.mxu0 %v378_v0  ;;  %v28_v1 = vld [vmem:[%s482_s1] sm:$0xff]  ;;  %v29_v2 = vld [vmem:[%s482_s1 + $0x8] sm:$0x3]  ;;  %vm354_vm2 = vmpackc.low %vm41_vm0, %vm379_vm1  ;;  %356 = vmatprep.subr.bf16.mxu1 %v378_v0  ;;  %v381_v4 = vmov 0.0   ;;  %vm37_vm4 = vcmask 80896   ;;  %vm131_vm5 = vcmask 523264   ;;  %v211_v34 = vstv %s488_s6 }
   0x2   :  { %v353_v3 = vpack.c.bf16 %v29_v2, %v28_v1  ;;  %319 = vmatprep.mubr.msk.f32.mxu0 %vm380_vm3, %v381_v4  ;;  %v116_v5 = vld [vmem:[%s483_s3] sm:$0xff]  ;;  %v117_v6 = vld [vmem:[%s483_s3 + $0x8] sm:$0xff]  ;;  %338 = vmatprep.mubr.msk.f32.mxu1 %vm380_vm3, %v381_v4  ;;  %v118_v8 = vld [vmem:[%s483_s3 + $0x10] sm:$0xff]  ;;  %vm212_vm6 = vcmask 261120   ;;  %vm286_vm7 = vcmask 7168  }
   0x3   :  { %v357_v7 = vpack.c.bf16 %v117_v6, %v116_v5  ;;  %v119_v9 = vld [vmem:[%s483_s3 + $0x18] sm:$0xff]  ;;  %v27_v10 = vld [vmem:[%s484_s0] sm:$0xff]  ;;  %v121_v13 = vld [vmem:[%s483_s3 + $0x28] sm:$0xff] }
   0x4   :  { %355 = vmatpush3.bf16.msk.msra.mxu0 %vm354_vm2, %v353_v3  ;;  %v360_v11 = vpack.c.bf16 %v119_v9, %v118_v8  ;;  %v120_v12 = vld [vmem:[%s483_s3 + $0x20] sm:$0xff]  ;;  %v122_v15 = vld [vmem:[%s483_s3 + $0x30] sm:$0xff]  ;;  %v123_v16 = vld [vmem:[%s483_s3 + $0x38] sm:$0xff] }
   0x5   :  { %358 = vmatpush3.bf16.msra.mxu1 %v357_v7  ;;  %368 = vmatprep.subr.bf16.mxu0 %v378_v0  ;;  %v363_v14 = vpack.c.bf16 %v121_v13, %v120_v12  ;;  %v366_v17 = vpack.c.bf16 %v123_v16, %v122_v15  ;;  %v206_v18 = vld [vmem:[%s485_s5] sm:$0xff]  ;;  %v207_v19 = vld [vmem:[%s485_s5 + $0x8] sm:$0xff]  ;;  %v208_v26 = vld [vmem:[%s485_s5 + $0x10] sm:$0xff] }
   0x6   :  { %359 = vmatprep.subr.bf16.mxu1 %v378_v0  ;;  %v369_v20 = vpack.c.bf16 %v207_v19, %v206_v18  ;;  %v292_v21 = vld [vmem:[%s486_s2] ss:$0 sm:$0xff]  ;;  %v209_v27 = vld [vmem:[%s485_s5 + $0x18] sm:$0xff] }
   0x7   :  { %320 = vmatmul.mubr.msk.f32.vlgmr.msra.gmra.mrb[0].mxu0 %vm37_vm4, %v27_v10  ;;  %v372_v28 = vpack.c.bf16 %v209_v27, %v208_v26  ;;  %v295_v29 = vld [vmem:[%s487_s4] ss:$0 sm:$0xff] }
   0x8   :  { %349 = vmatprep.mubr.msk.f32.mxu0 %vm380_vm3, %v381_v4  ;;  %370 = vmatpush3.bf16.msra.mxu0 %v369_v20 }
   0x9   :  { %361 = vmatpush3.bf16.msra.mxu1 %v360_v11  ;;  %371 = vmatprep.subr.bf16.mxu0 %v378_v0 }
   0xa   :  { %362 = vmatprep.subr.bf16.mxu1 %v378_v0 }
   0xc   :  { %373 = vmatpush3.bf16.msra.mxu0 %v372_v28 }
   0xd   :  { %364 = vmatpush3.bf16.msra.mxu1 %v363_v14 }
   0xe   :  { %365 = vmatprep.subr.bf16.mxu1 %v378_v0 }
  0x11   :  { %367 = vmatpush3.bf16.msra.mxu1 %v366_v17 }
  0xda   :  { %v111_v22 = vpop.f32.mrb[0].mxu0 }
  0xdb   :  { %v112_v23 = vadd.f32 %v292_v21, %v111_v22  ;;  %v321_v24 = vpop.f32.mrb[1].mxu0 }
  0xdd   :  { %v115_v25 = vmax.f32 %v112_v23, 0.0 }
  0xdf   :  { %339 = vmatmul.mubr.msk.f32.vlgmr.msra.gmra.mrb[0].mxu1 %vm131_vm5, %v115_v25 }
 0x1b2   :  { %v201_v30 = vpop.f32.mrb[0].mxu1 }
 0x1b3   :  { %v202_v31 = vadd.f32 %v295_v29, %v201_v30  ;;  %v340_v32 = vpop.f32.mrb[1].mxu1 }
 0x1b5   :  { %v205_v33 = vmax.f32 %v202_v31, 0.0 }
 0x1b7   :  { %350 = vmatmul.mubr.msk.f32.vlgmr.msra.gmra.mrb[2].mxu0 %vm212_vm6, %v205_v33 }
 0x28a   :  { %v282_v35 = vpop.f32.mrb[2].mxu0 }
 0x28b   :  { %v283_v36 = vadd.f32 %v282_v35, %v211_v34  ;;  %v351_v37 = vpop.f32.mrb[3].mxu0 }
 0x28d   :  { %287 = vst.msk [vmem:[%s489_s7] sm:$0xff] %vm286_vm7, %v283_v36 }

</bundles_post_ra>
